<compile_context>
chip_gen: v6e
topology: v6e:2x2x1
jax: 0.10.0
libtpu: 0.0.40
codegen_flags: <defaults>
</compile_context>

<pallas_src>
import functools
import math

import jax
import jax.numpy as jnp
import numpy as np
from jax.experimental import pallas as pl
from jax.experimental.pallas import tpu as pltpu

# ---------------- config (small, consistent with the module) ----------------
BATCH = 2
Z_DIM = 32
C_DIM = 8
W_DIM = 32
NUM_WS = 4
NUM_LAYERS = 8
LR_MULT = 0.01
EPS = 1e-8
LRELU_GAIN = math.sqrt(2.0)   # bias_act default gain for 'lrelu'
LRELU_ALPHA = 0.2

# Layer-0 weight is split into a z-part and an embed-part so we can avoid a
# lane-axis concatenate; with embed_features == w_dim this requires z_dim==w_dim.
assert Z_DIM == W_DIM, "weight packing assumes z_dim == w_dim (== embed_features)"


def _norm_2nd_moment(x):
    return x * jax.lax.rsqrt(jnp.mean(x * x, axis=1, keepdims=True) + EPS)


def _lrelu(h):
    return jnp.where(h >= 0, h, jnp.float32(LRELU_ALPHA) * h) * jnp.float32(LRELU_GAIN)


# ------------------------------- kernel -------------------------------------
def mapping_kernel(z_ref, c_ref, ew_ref, wpack_ref, bpack_ref, out_ref, *,
                   num_layers):
    """Whole mapping network in one kernel invocation (all tensors in VMEM).

    Packed parameter layout (gains already folded in, weights [in, out]):
      ew_ref    : [c_dim, w_dim]                 embed weight (pre-scaled)
      wpack_ref : [num_layers + 1, w_dim, w_dim] rows 0,1 = layer-0 (z / embed
                                                 halves), row i+1 = layer i
      bpack_ref : [num_layers + 1, w_dim]        row 0 = embed bias,
                                                 row i+1 = layer-i bias
    """
    # --- input block: normalize z, embed + normalize c ---
    z = z_ref[...].astype(jnp.float32)
    x = _norm_2nd_moment(z)

    c = c_ref[...].astype(jnp.float32)
    y = jnp.dot(c, ew_ref[...], preferred_element_type=jnp.float32) + bpack_ref[0:1, :]
    y = _norm_2nd_moment(y)

    # --- layer 0: split contraction replaces concat([x, y], axis=1) ---
    h = (jnp.dot(x, wpack_ref[0], preferred_element_type=jnp.float32)
         + jnp.dot(y, wpack_ref[1], preferred_element_type=jnp.float32)
         + bpack_ref[1:2, :])
    x = _lrelu(h)

    # --- layers 1 .. num_layers-1 ---
    for i in range(1, num_layers):
        h = (jnp.dot(x, wpack_ref[i + 1], preferred_element_type=jnp.float32)
             + bpack_ref[i + 1:i + 2, :])
        x = _lrelu(h)

    out_ref[...] = x.astype(out_ref.dtype)


# ----------------------------- parameters -----------------------------------
def init_params(key):
    """PyTorch-style raw parameters (module __init__ shapes/semantics).

    Biases are randomized (rather than the module's zero init) purely to make
    the numerical check exercise the bias/bias_gain path.
    """
    embed_features = W_DIM
    features_list = [Z_DIM + embed_features] + [W_DIM] * (NUM_LAYERS - 1) + [W_DIM]

    keys = jax.random.split(key, 2 * NUM_LAYERS + 2)
    params = {}

    # embed: FullyConnectedLayer(c_dim, embed_features), lr_multiplier=1
    params["embed_w"] = jax.random.normal(keys[0], (embed_features, C_DIM), jnp.float32)
    params["embed_b"] = jax.random.normal(keys[1], (1, embed_features), jnp.float32)

    layer_ws, layer_bs, gains = [], [], []
    for idx in range(NUM_LAYERS):
        in_f = features_list[idx]
        out_f = features_list[idx + 1]
        # weight = randn([out, in]) / lr_multiplier
        w = jax.random.normal(keys[2 + 2 * idx], (out_f, in_f), jnp.float32) / LR_MULT
        b = jax.random.normal(keys[3 + 2 * idx], (1, out_f), jnp.float32)
        layer_ws.append(w)
        layer_bs.append(b)
        gains.append((LR_MULT / math.sqrt(in_f), LR_MULT))

    params["layer_ws"] = layer_ws
    params["layer_bs"] = layer_bs
    params["gains"] = tuple(gains)
    return params


def pack_params(params):
    """Host-side one-time fold: apply gains, transpose to [in,out], pack."""
    # embed (lr_multiplier=1): weight_gain = 1/sqrt(c_dim), bias_gain = 1.
    ew_t = params["embed_w"].T * jnp.float32(1.0 / math.sqrt(C_DIM))   # [C_DIM, W_DIM]

    w_chunks = []
    b_rows = [params["embed_b"].reshape(1, W_DIM)]
    for i, (w, b, (wg, bg)) in enumerate(
            zip(params["layer_ws"], params["layer_bs"], params["gains"])):
        wt = (w * jnp.float32(wg)).T                                   # [in, out]
        if i == 0:
            w_chunks.append(wt[:Z_DIM])        # z-half of layer-0 weight
            w_chunks.append(wt[Z_DIM:])        # embed-half of layer-0 weight
        else:
            w_chunks.append(wt)
        b_rows.append((b * jnp.float32(bg)).reshape(1, W_DIM))

    return {
        "embed_wt": ew_t,                                   # [C_DIM, W_DIM]
        "w_pack": jnp.stack(w_chunks, axis=0),              # [NUM_LAYERS+1, W_DIM, W_DIM]
        "b_pack": jnp.concatenate(b_rows, axis=0),          # [NUM_LAYERS+1, W_DIM]
    }


# ------------------------------- wrapper -------------------------------------
def mapping_network(z, c, packed):
    """z:[B,z_dim], c:[B,c_dim] -> ws:[B,num_ws,w_dim] (float32)."""
    B = z.shape[0]
    kernel = functools.partial(mapping_kernel, num_layers=NUM_LAYERS)
    vmem = pl.BlockSpec(memory_space=pltpu.MemorySpace.VMEM)

    flops = 2 * B * (C_DIM * W_DIM                       # embed
                     + (Z_DIM + W_DIM) * W_DIM           # layer 0 (split)
                     + (NUM_LAYERS - 1) * W_DIM * W_DIM) # layers 1..7
    bytes_accessed = 4 * (z.size + c.size
                          + packed["embed_wt"].size
                          + packed["w_pack"].size
                          + packed["b_pack"].size
                          + B * W_DIM)
    cost = pl.CostEstimate(flops=flops, transcendentals=2 * B,
                           bytes_accessed=bytes_accessed)

    x = pl.pallas_call(
        kernel,
        out_shape=jax.ShapeDtypeStruct((B, W_DIM), jnp.float32),
        in_specs=[vmem] * 5,
        out_specs=vmem,
        cost_estimate=cost,
    )(z, c, packed["embed_wt"], packed["w_pack"], packed["b_pack"])

    # num_ws broadcast done outside the kernel (keeps kernel store path clean).
    return jnp.broadcast_to(x[:, None, :], (B, NUM_WS, W_DIM))


# ------------------------------ reference ------------------------------------
def mapping_network_ref(z, c, params):
    """Pure-JAX reference using RAW (unfolded, untransposed) parameters."""
    x = _norm_2nd_moment(z.astype(jnp.float32))
    ew = params["embed_w"] * (1.0 / math.sqrt(C_DIM))
    y = c.astype(jnp.float32) @ ew.T + params["embed_b"]
    y = _norm_2nd_moment(y)
    x = jnp.concatenate([x, y], axis=1)
    for (w, b, (wg, bg)) in zip(params["layer_ws"], params["layer_bs"], params["gains"]):
        h = x @ (w * wg).T + b * bg
        x = jnp.where(h >= 0, h, LRELU_ALPHA * h) * LRELU_GAIN
    return jnp.broadcast_to(x[:, None, :], (x.shape[0], NUM_WS, W_DIM))


if __name__ == "__main__":
    key = jax.random.PRNGKey(0)
    k_param, k_z, k_c = jax.random.split(key, 3)

    params = init_params(k_param)
    packed = pack_params(params)

    z = jax.random.normal(k_z, (BATCH, Z_DIM), jnp.float32)
    c = jax.random.normal(k_c, (BATCH, C_DIM), jnp.float32)

    ws = mapping_network(z, c, packed)
    ws = jax.block_until_ready(ws)

    ws_ref = mapping_network_ref(z, c, params)
    assert ws.shape == (BATCH, NUM_WS, W_DIM)
    np.testing.assert_allclose(np.asarray(ws), np.asarray(ws_ref), rtol=1e-4, atol=1e-4)

    print("KERNEL_OK")
</pallas_src>

<mosaic_0001>
module attributes {stable_mosaic.version = 11 : i64} {
  func.func @mapping_kernel(%arg0: memref<2x32xf32, #tpu.memory_space<vmem>>, %arg1: memref<2x8xf32, #tpu.memory_space<vmem>>, %arg2: memref<8x32xf32, #tpu.memory_space<vmem>>, %arg3: memref<9x32x32xf32, #tpu.memory_space<vmem>>, %arg4: memref<9x32xf32, #tpu.memory_space<vmem>>, %arg5: memref<2x32xf32, #tpu.memory_space<vmem>>) attributes {dimension_semantics = [], scalar_prefetch = 0 : i64, scratch_operands = 0 : i64, tpu.core_type = #tpu.core_type<tc>} {
    %c0 = arith.constant 0 : index
    %c0_0 = arith.constant 0 : index
    %0 = vector.load %arg0[%c0, %c0_0] : memref<2x32xf32, #tpu.memory_space<vmem>>, vector<2x32xf32>
    %1 = arith.mulf %0, %0 : vector<2x32xf32>
    %cst = arith.constant dense<0.000000e+00> : vector<2xf32>
    %2 = vector.multi_reduction <add>, %1, %cst [1] : vector<2x32xf32> to vector<2xf32>
    %3 = vector.shape_cast %2 : vector<2xf32> to vector<2x1xf32>
    %cst_1 = arith.constant 3.200000e+01 : f32
    %4 = vector.broadcast %cst_1 : f32 to vector<2x1xf32>
    %5 = arith.divf %3, %4 : vector<2x1xf32>
    %cst_2 = arith.constant 9.99999993E-9 : f32
    %6 = vector.broadcast %cst_2 : f32 to vector<2x1xf32>
    %7 = arith.addf %5, %6 : vector<2x1xf32>
    %8 = math.rsqrt %7 : vector<2x1xf32>
    %9 = vector.broadcast %8 : vector<2x1xf32> to vector<2x32xf32>
    %10 = arith.mulf %0, %9 : vector<2x32xf32>
    %c0_3 = arith.constant 0 : index
    %c0_4 = arith.constant 0 : index
    %11 = vector.load %arg1[%c0_3, %c0_4] : memref<2x8xf32, #tpu.memory_space<vmem>>, vector<2x8xf32>
    %c0_5 = arith.constant 0 : index
    %c0_6 = arith.constant 0 : index
    %12 = vector.load %arg2[%c0_5, %c0_6] : memref<8x32xf32, #tpu.memory_space<vmem>>, vector<8x32xf32>
    %cst_7 = arith.constant dense<0.000000e+00> : vector<2x32xf32>
    %13 = tpu.matmul %11, %12, %cst_7 {dimension_numbers = #tpu.dot_dimension_numbers<[1], [0], [0], [1], [0, 0, 1, 1], [], []>} : vector<2x8xf32>, vector<8x32xf32>, vector<2x32xf32> -> vector<2x32xf32>
    %c0_8 = arith.constant 0 : index
    %c0_9 = arith.constant 0 : index
    %14 = vector.load %arg4[%c0_8, %c0_9] : memref<9x32xf32, #tpu.memory_space<vmem>>, vector<1x32xf32>
    %15 = vector.broadcast %14 : vector<1x32xf32> to vector<2x32xf32>
    %16 = arith.addf %13, %15 : vector<2x32xf32>
    %17 = arith.mulf %16, %16 : vector<2x32xf32>
    %cst_10 = arith.constant dense<0.000000e+00> : vector<2xf32>
    %18 = vector.multi_reduction <add>, %17, %cst_10 [1] : vector<2x32xf32> to vector<2xf32>
    %19 = vector.shape_cast %18 : vector<2xf32> to vector<2x1xf32>
    %cst_11 = arith.constant 3.200000e+01 : f32
    %20 = vector.broadcast %cst_11 : f32 to vector<2x1xf32>
    %21 = arith.divf %19, %20 : vector<2x1xf32>
    %cst_12 = arith.constant 9.99999993E-9 : f32
    %22 = vector.broadcast %cst_12 : f32 to vector<2x1xf32>
    %23 = arith.addf %21, %22 : vector<2x1xf32>
    %24 = math.rsqrt %23 : vector<2x1xf32>
    %25 = vector.broadcast %24 : vector<2x1xf32> to vector<2x32xf32>
    %26 = arith.mulf %16, %25 : vector<2x32xf32>
    %c0_13 = arith.constant 0 : index
    %c0_14 = arith.constant 0 : index
    %c0_15 = arith.constant 0 : index
    %27 = vector.load %arg3[%c0_13, %c0_14, %c0_15] : memref<9x32x32xf32, #tpu.memory_space<vmem>>, vector<1x32x32xf32>
    %28 = vector.shape_cast %27 : vector<1x32x32xf32> to vector<32x32xf32>
    %cst_16 = arith.constant dense<0.000000e+00> : vector<2x32xf32>
    %29 = tpu.matmul %10, %28, %cst_16 {dimension_numbers = #tpu.dot_dimension_numbers<[1], [0], [0], [1], [0, 0, 1, 1], [], []>} : vector<2x32xf32>, vector<32x32xf32>, vector<2x32xf32> -> vector<2x32xf32>
    %c1 = arith.constant 1 : index
    %c0_17 = arith.constant 0 : index
    %c0_18 = arith.constant 0 : index
    %30 = vector.load %arg3[%c1, %c0_17, %c0_18] : memref<9x32x32xf32, #tpu.memory_space<vmem>>, vector<1x32x32xf32>
    %31 = vector.shape_cast %30 : vector<1x32x32xf32> to vector<32x32xf32>
    %cst_19 = arith.constant dense<0.000000e+00> : vector<2x32xf32>
    %32 = tpu.matmul %26, %31, %cst_19 {dimension_numbers = #tpu.dot_dimension_numbers<[1], [0], [0], [1], [0, 0, 1, 1], [], []>} : vector<2x32xf32>, vector<32x32xf32>, vector<2x32xf32> -> vector<2x32xf32>
    %33 = arith.addf %29, %32 : vector<2x32xf32>
    %c1_20 = arith.constant 1 : index
    %c0_21 = arith.constant 0 : index
    %34 = vector.load %arg4[%c1_20, %c0_21] : memref<9x32xf32, #tpu.memory_space<vmem>>, vector<1x32xf32>
    %35 = vector.broadcast %34 : vector<1x32xf32> to vector<2x32xf32>
    %36 = arith.addf %33, %35 : vector<2x32xf32>
    %cst_22 = arith.constant 0.000000e+00 : f32
    %37 = vector.broadcast %cst_22 : f32 to vector<2x32xf32>
    %38 = arith.cmpf oge, %36, %37 : vector<2x32xf32>
    %cst_23 = arith.constant 2.000000e-01 : f32
    %39 = vector.broadcast %cst_23 : f32 to vector<2x32xf32>
    %40 = arith.mulf %39, %36 : vector<2x32xf32>
    %41 = arith.select %38, %36, %40 : vector<2x32xi1>, vector<2x32xf32>
    %cst_24 = arith.constant 1.41421354 : f32
    %42 = vector.broadcast %cst_24 : f32 to vector<2x32xf32>
    %43 = arith.mulf %41, %42 : vector<2x32xf32>
    %c2 = arith.constant 2 : index
    %c0_25 = arith.constant 0 : index
    %c0_26 = arith.constant 0 : index
    %44 = vector.load %arg3[%c2, %c0_25, %c0_26] : memref<9x32x32xf32, #tpu.memory_space<vmem>>, vector<1x32x32xf32>
    %45 = vector.shape_cast %44 : vector<1x32x32xf32> to vector<32x32xf32>
    %cst_27 = arith.constant dense<0.000000e+00> : vector<2x32xf32>
    %46 = tpu.matmul %43, %45, %cst_27 {dimension_numbers = #tpu.dot_dimension_numbers<[1], [0], [0], [1], [0, 0, 1, 1], [], []>} : vector<2x32xf32>, vector<32x32xf32>, vector<2x32xf32> -> vector<2x32xf32>
    %c2_28 = arith.constant 2 : index
    %c0_29 = arith.constant 0 : index
    %47 = vector.load %arg4[%c2_28, %c0_29] : memref<9x32xf32, #tpu.memory_space<vmem>>, vector<1x32xf32>
    %48 = vector.broadcast %47 : vector<1x32xf32> to vector<2x32xf32>
    %49 = arith.addf %46, %48 : vector<2x32xf32>
    %cst_30 = arith.constant 0.000000e+00 : f32
    %50 = vector.broadcast %cst_30 : f32 to vector<2x32xf32>
    %51 = arith.cmpf oge, %49, %50 : vector<2x32xf32>
    %cst_31 = arith.constant 2.000000e-01 : f32
    %52 = vector.broadcast %cst_31 : f32 to vector<2x32xf32>
    %53 = arith.mulf %52, %49 : vector<2x32xf32>
    %54 = arith.select %51, %49, %53 : vector<2x32xi1>, vector<2x32xf32>
    %cst_32 = arith.constant 1.41421354 : f32
    %55 = vector.broadcast %cst_32 : f32 to vector<2x32xf32>
    %56 = arith.mulf %54, %55 : vector<2x32xf32>
    %c3 = arith.constant 3 : index
    %c0_33 = arith.constant 0 : index
    %c0_34 = arith.constant 0 : index
    %57 = vector.load %arg3[%c3, %c0_33, %c0_34] : memref<9x32x32xf32, #tpu.memory_space<vmem>>, vector<1x32x32xf32>
    %58 = vector.shape_cast %57 : vector<1x32x32xf32> to vector<32x32xf32>
    %cst_35 = arith.constant dense<0.000000e+00> : vector<2x32xf32>
    %59 = tpu.matmul %56, %58, %cst_35 {dimension_numbers = #tpu.dot_dimension_numbers<[1], [0], [0], [1], [0, 0, 1, 1], [], []>} : vector<2x32xf32>, vector<32x32xf32>, vector<2x32xf32> -> vector<2x32xf32>
    %c3_36 = arith.constant 3 : index
    %c0_37 = arith.constant 0 : index
    %60 = vector.load %arg4[%c3_36, %c0_37] : memref<9x32xf32, #tpu.memory_space<vmem>>, vector<1x32xf32>
    %61 = vector.broadcast %60 : vector<1x32xf32> to vector<2x32xf32>
    %62 = arith.addf %59, %61 : vector<2x32xf32>
    %cst_38 = arith.constant 0.000000e+00 : f32
    %63 = vector.broadcast %cst_38 : f32 to vector<2x32xf32>
    %64 = arith.cmpf oge, %62, %63 : vector<2x32xf32>
    %cst_39 = arith.constant 2.000000e-01 : f32
    %65 = vector.broadcast %cst_39 : f32 to vector<2x32xf32>
    %66 = arith.mulf %65, %62 : vector<2x32xf32>
    %67 = arith.select %64, %62, %66 : vector<2x32xi1>, vector<2x32xf32>
    %cst_40 = arith.constant 1.41421354 : f32
    %68 = vector.broadcast %cst_40 : f32 to vector<2x32xf32>
    %69 = arith.mulf %67, %68 : vector<2x32xf32>
    %c4 = arith.constant 4 : index
    %c0_41 = arith.constant 0 : index
    %c0_42 = arith.constant 0 : index
    %70 = vector.load %arg3[%c4, %c0_41, %c0_42] : memref<9x32x32xf32, #tpu.memory_space<vmem>>, vector<1x32x32xf32>
    %71 = vector.shape_cast %70 : vector<1x32x32xf32> to vector<32x32xf32>
    %cst_43 = arith.constant dense<0.000000e+00> : vector<2x32xf32>
    %72 = tpu.matmul %69, %71, %cst_43 {dimension_numbers = #tpu.dot_dimension_numbers<[1], [0], [0], [1], [0, 0, 1, 1], [], []>} : vector<2x32xf32>, vector<32x32xf32>, vector<2x32xf32> -> vector<2x32xf32>
    %c4_44 = arith.constant 4 : index
    %c0_45 = arith.constant 0 : index
    %73 = vector.load %arg4[%c4_44, %c0_45] : memref<9x32xf32, #tpu.memory_space<vmem>>, vector<1x32xf32>
    %74 = vector.broadcast %73 : vector<1x32xf32> to vector<2x32xf32>
    %75 = arith.addf %72, %74 : vector<2x32xf32>
    %cst_46 = arith.constant 0.000000e+00 : f32
    %76 = vector.broadcast %cst_46 : f32 to vector<2x32xf32>
    %77 = arith.cmpf oge, %75, %76 : vector<2x32xf32>
    %cst_47 = arith.constant 2.000000e-01 : f32
    %78 = vector.broadcast %cst_47 : f32 to vector<2x32xf32>
    %79 = arith.mulf %78, %75 : vector<2x32xf32>
    %80 = arith.select %77, %75, %79 : vector<2x32xi1>, vector<2x32xf32>
    %cst_48 = arith.constant 1.41421354 : f32
    %81 = vector.broadcast %cst_48 : f32 to vector<2x32xf32>
    %82 = arith.mulf %80, %81 : vector<2x32xf32>
    %c5 = arith.constant 5 : index
    %c0_49 = arith.constant 0 : index
    %c0_50 = arith.constant 0 : index
    %83 = vector.load %arg3[%c5, %c0_49, %c0_50] : memref<9x32x32xf32, #tpu.memory_space<vmem>>, vector<1x32x32xf32>
    %84 = vector.shape_cast %83 : vector<1x32x32xf32> to vector<32x32xf32>
    %cst_51 = arith.constant dense<0.000000e+00> : vector<2x32xf32>
    %85 = tpu.matmul %82, %84, %cst_51 {dimension_numbers = #tpu.dot_dimension_numbers<[1], [0], [0], [1], [0, 0, 1, 1], [], []>} : vector<2x32xf32>, vector<32x32xf32>, vector<2x32xf32> -> vector<2x32xf32>
    %c5_52 = arith.constant 5 : index
    %c0_53 = arith.constant 0 : index
    %86 = vector.load %arg4[%c5_52, %c0_53] : memref<9x32xf32, #tpu.memory_space<vmem>>, vector<1x32xf32>
    %87 = vector.broadcast %86 : vector<1x32xf32> to vector<2x32xf32>
    %88 = arith.addf %85, %87 : vector<2x32xf32>
    %cst_54 = arith.constant 0.000000e+00 : f32
    %89 = vector.broadcast %cst_54 : f32 to vector<2x32xf32>
    %90 = arith.cmpf oge, %88, %89 : vector<2x32xf32>
    %cst_55 = arith.constant 2.000000e-01 : f32
    %91 = vector.broadcast %cst_55 : f32 to vector<2x32xf32>
    %92 = arith.mulf %91, %88 : vector<2x32xf32>
    %93 = arith.select %90, %88, %92 : vector<2x32xi1>, vector<2x32xf32>
    %cst_56 = arith.constant 1.41421354 : f32
    %94 = vector.broadcast %cst_56 : f32 to vector<2x32xf32>
    %95 = arith.mulf %93, %94 : vector<2x32xf32>
    %c6 = arith.constant 6 : index
    %c0_57 = arith.constant 0 : index
    %c0_58 = arith.constant 0 : index
    %96 = vector.load %arg3[%c6, %c0_57, %c0_58] : memref<9x32x32xf32, #tpu.memory_space<vmem>>, vector<1x32x32xf32>
    %97 = vector.shape_cast %96 : vector<1x32x32xf32> to vector<32x32xf32>
    %cst_59 = arith.constant dense<0.000000e+00> : vector<2x32xf32>
    %98 = tpu.matmul %95, %97, %cst_59 {dimension_numbers = #tpu.dot_dimension_numbers<[1], [0], [0], [1], [0, 0, 1, 1], [], []>} : vector<2x32xf32>, vector<32x32xf32>, vector<2x32xf32> -> vector<2x32xf32>
    %c6_60 = arith.constant 6 : index
    %c0_61 = arith.constant 0 : index
    %99 = vector.load %arg4[%c6_60, %c0_61] : memref<9x32xf32, #tpu.memory_space<vmem>>, vector<1x32xf32>
    %100 = vector.broadcast %99 : vector<1x32xf32> to vector<2x32xf32>
    %101 = arith.addf %98, %100 : vector<2x32xf32>
    %cst_62 = arith.constant 0.000000e+00 : f32
    %102 = vector.broadcast %cst_62 : f32 to vector<2x32xf32>
    %103 = arith.cmpf oge, %101, %102 : vector<2x32xf32>
    %cst_63 = arith.constant 2.000000e-01 : f32
    %104 = vector.broadcast %cst_63 : f32 to vector<2x32xf32>
    %105 = arith.mulf %104, %101 : vector<2x32xf32>
    %106 = arith.select %103, %101, %105 : vector<2x32xi1>, vector<2x32xf32>
    %cst_64 = arith.constant 1.41421354 : f32
    %107 = vector.broadcast %cst_64 : f32 to vector<2x32xf32>
    %108 = arith.mulf %106, %107 : vector<2x32xf32>
    %c7 = arith.constant 7 : index
    %c0_65 = arith.constant 0 : index
    %c0_66 = arith.constant 0 : index
    %109 = vector.load %arg3[%c7, %c0_65, %c0_66] : memref<9x32x32xf32, #tpu.memory_space<vmem>>, vector<1x32x32xf32>
    %110 = vector.shape_cast %109 : vector<1x32x32xf32> to vector<32x32xf32>
    %cst_67 = arith.constant dense<0.000000e+00> : vector<2x32xf32>
    %111 = tpu.matmul %108, %110, %cst_67 {dimension_numbers = #tpu.dot_dimension_numbers<[1], [0], [0], [1], [0, 0, 1, 1], [], []>} : vector<2x32xf32>, vector<32x32xf32>, vector<2x32xf32> -> vector<2x32xf32>
    %c7_68 = arith.constant 7 : index
    %c0_69 = arith.constant 0 : index
    %112 = vector.load %arg4[%c7_68, %c0_69] : memref<9x32xf32, #tpu.memory_space<vmem>>, vector<1x32xf32>
    %113 = vector.broadcast %112 : vector<1x32xf32> to vector<2x32xf32>
    %114 = arith.addf %111, %113 : vector<2x32xf32>
    %cst_70 = arith.constant 0.000000e+00 : f32
    %115 = vector.broadcast %cst_70 : f32 to vector<2x32xf32>
    %116 = arith.cmpf oge, %114, %115 : vector<2x32xf32>
    %cst_71 = arith.constant 2.000000e-01 : f32
    %117 = vector.broadcast %cst_71 : f32 to vector<2x32xf32>
    %118 = arith.mulf %117, %114 : vector<2x32xf32>
    %119 = arith.select %116, %114, %118 : vector<2x32xi1>, vector<2x32xf32>
    %cst_72 = arith.constant 1.41421354 : f32
    %120 = vector.broadcast %cst_72 : f32 to vector<2x32xf32>
    %121 = arith.mulf %119, %120 : vector<2x32xf32>
    %c8 = arith.constant 8 : index
    %c0_73 = arith.constant 0 : index
    %c0_74 = arith.constant 0 : index
    %122 = vector.load %arg3[%c8, %c0_73, %c0_74] : memref<9x32x32xf32, #tpu.memory_space<vmem>>, vector<1x32x32xf32>
    %123 = vector.shape_cast %122 : vector<1x32x32xf32> to vector<32x32xf32>
    %cst_75 = arith.constant dense<0.000000e+00> : vector<2x32xf32>
    %124 = tpu.matmul %121, %123, %cst_75 {dimension_numbers = #tpu.dot_dimension_numbers<[1], [0], [0], [1], [0, 0, 1, 1], [], []>} : vector<2x32xf32>, vector<32x32xf32>, vector<2x32xf32> -> vector<2x32xf32>
    %c8_76 = arith.constant 8 : index
    %c0_77 = arith.constant 0 : index
    %125 = vector.load %arg4[%c8_76, %c0_77] : memref<9x32xf32, #tpu.memory_space<vmem>>, vector<1x32xf32>
    %126 = vector.broadcast %125 : vector<1x32xf32> to vector<2x32xf32>
    %127 = arith.addf %124, %126 : vector<2x32xf32>
    %cst_78 = arith.constant 0.000000e+00 : f32
    %128 = vector.broadcast %cst_78 : f32 to vector<2x32xf32>
    %129 = arith.cmpf oge, %127, %128 : vector<2x32xf32>
    %cst_79 = arith.constant 2.000000e-01 : f32
    %130 = vector.broadcast %cst_79 : f32 to vector<2x32xf32>
    %131 = arith.mulf %130, %127 : vector<2x32xf32>
    %132 = arith.select %129, %127, %131 : vector<2x32xi1>, vector<2x32xf32>
    %cst_80 = arith.constant 1.41421354 : f32
    %133 = vector.broadcast %cst_80 : f32 to vector<2x32xf32>
    %134 = arith.mulf %132, %133 : vector<2x32xf32>
    %c0_81 = arith.constant 0 : index
    %c0_82 = arith.constant 0 : index
    %135 = vector.load %arg5[%c0_81, %c0_82] : memref<2x32xf32, #tpu.memory_space<vmem>>, vector<2x32xf32>
    tpu.vector_store %arg5[%c0_81, %c0_82], %134 {strides = array<i32>} : memref<2x32xf32, #tpu.memory_space<vmem>>, vector<2x32xf32>,
    return
  }
}

</mosaic_0001>

<bundles_post_ra>
// kernel: tpu_custom_call.1
= control target key start
LH: loop header
LB: loop body
LE: loop exit
PB: predicated region body
PF: predicated region fallthrough
CT: control target
= control target key end

     0   :  { %10 = vsyncpa [#allocation3], 0  ;;  %s1421_s0 = inlined_call_operand.hbm [shape: f32[2,32], index: 0, kind: input, shape index: {}]   ;;  %s1422_s1 = inlined_call_operand.hbm [shape: f32[2,8], index: 1, kind: input, shape index: {}]   ;;  %s1423_s2 = inlined_call_operand.hbm [shape: f32[8,32], index: 2, kind: input, shape index: {}]   ;;  %s1424_s3 = inlined_call_operand.hbm [shape: f32[9,32,32], index: 3, kind: input, shape index: {}]   ;;  %s1425_s4 = inlined_call_operand.hbm [shape: f32[9,32], index: 4, kind: input, shape index: {}]   ;;  %s1426_s5 = inlined_call_operand.hbm [shape: f32[2,32], index: 5, kind: output, shape index: {}]  }
   0x1   :  { %11 = vsyncpa [#allocation6], 0 }
   0x2   :  { %12 = vsyncpa [#allocation9], 0 }
   0x3   :  { %13 = vsyncpa [#allocation4], 0  ;;  %s1288_s18 = smov [#allocation5]   ;;  %s1289_s20 = smov [#allocation8]  }
   0x4   :  { %s30_s19 = sshll.u32 %s1288_s18, 4  ;;  %s49_s21 = sshll.u32 %s1289_s20, 4  ;;  %s31_s19 = int_to_ptr.vmem [resolvable:$true] %s30_s19  ;;  %s50_s21 = int_to_ptr.vmem [resolvable:$true] %s49_s21 }
   0x5   :  { %s1168_s22 = scalar_lea.vmem %s31_s19, 32  ;;  %p1173_p1 = scmp.lt.s32.totalorder %s31_s19, %s31_s19 }
   0x6   :  { %p1169_p0 = scmp.ne.s32.totalorder %s31_s19, %s1168_s22  ;;  %p1174_p2 = scmp.lt.s32.totalorder %s1168_s22, %s1168_s22 }
   0x8   :  { %p1175_p3 = por %p1174_p2, %p1173_p1 }
   0xa   :  { %p1176_p4 = pnand %p1175_p3, %p1169_p0 }
   0xc   :  { %1179 = shalt.err (!%p1176_p4)
}
   0xd   :  { %33 = dma.hbm_to_vmem [thread:$0]  %s1422_s1, 32, %s31_s19, [#allocation6]  }
   0xe   :  { %s1188_s25 = scalar_lea.vmem %s50_s21, 4608  ;;  %p1193_p6 = scmp.lt.s32.totalorder %s50_s21, %s50_s21 }
   0xf   :  { %p1189_p5 = scmp.ne.s32.totalorder %s50_s21, %s1188_s25  ;;  %p1194_p7 = scmp.lt.s32.totalorder %s1188_s25, %s1188_s25 }
  0x11   :  { %p1195_p8 = por %p1194_p7, %p1193_p6 }
  0x13   :  { %p1196_p9 = pnand %p1195_p8, %p1189_p5 }
  0x15   :  { %1199 = shalt.err (!%p1196_p9)
}
  0x16   :  { %s1290_s26 = smov 128   ;;  %s1291_s27 = smov 8  }
  0x17   :  { %55 = dma.hbm_to_vmem [thread:$0]  %s1424_s3, 4608, %s50_s21, [#allocation9], %s1290_s26, %s1290_s26, %s1291_s27  }
  0x18   :  { %s1292_s30 = smov [#allocation2]   ;;  %s1293_s7 = smov [#allocation7]  }
  0x19   :  { %s20_s6 = sshll.u32 %s1292_s30, 4  ;;  %s40_s1 = sshll.u32 %s1293_s7, 4  ;;  %s21_s6 = int_to_ptr.vmem [resolvable:$true] %s20_s6  ;;  %s41_s1 = int_to_ptr.vmem [resolvable:$true] %s40_s1 }
  0x1a   :  { %s1208_s8 = scalar_lea.vmem %s21_s6, 32  ;;  %p1213_p11 = scmp.lt.s32.totalorder %s21_s6, %s21_s6 }
  0x1b   :  { %p1209_p10 = scmp.ne.s32.totalorder %s21_s6, %s1208_s8  ;;  %p1214_p12 = scmp.lt.s32.totalorder %s1208_s8, %s1208_s8 }
  0x1d   :  { %p1215_p13 = por %p1214_p12, %p1213_p11 }
  0x1f   :  { %p1216_p0 = pnand %p1215_p13, %p1209_p10 }
  0x21   :  { %1219 = shalt.err (!%p1216_p0)
}
  0x22   :  { %23 = dma.hbm_to_vmem [thread:$0]  %s1421_s0, 32, %s21_s6, [#allocation3]  }
  0x23   :  { %s1228_s11 = scalar_lea.vmem %s41_s1, 128  ;;  %p1233_p2 = scmp.lt.s32.totalorder %s41_s1, %s41_s1 }
  0x24   :  { %p1229_p1 = scmp.ne.s32.totalorder %s41_s1, %s1228_s11  ;;  %p1234_p3 = scmp.lt.s32.totalorder %s1228_s11, %s1228_s11 }
  0x26   :  { %p1235_p4 = por %p1234_p3, %p1233_p2 }
  0x28   :  { %p1236_p5 = pnand %p1235_p4, %p1229_p1 }
  0x2a   :  { %1239 = shalt.err (!%p1236_p5)
}
  0x2b   :  { %43 = dma.hbm_to_vmem [thread:$0]  %s1423_s2, 128, %s41_s1, [#allocation6]  }
  0x2c   :  { %s1294_s13 = smov [#allocation10]  }
  0x2d   :  { %s61_s14 = sshll.u32 %s1294_s13, 4  ;;  %s62_s14 = int_to_ptr.vmem [resolvable:$true] %s61_s14 }
  0x2e   :  { %s1248_s15 = scalar_lea.vmem %s62_s14, 256  ;;  %p1253_p7 = scmp.lt.s32.totalorder %s62_s14, %s62_s14 }
  0x2f   :  { %p1249_p6 = scmp.ne.s32.totalorder %s62_s14, %s1248_s15  ;;  %p1254_p8 = scmp.lt.s32.totalorder %s1248_s15, %s1248_s15 }
  0x31   :  { %p1255_p9 = por %p1254_p8, %p1253_p7 }
  0x33   :  { %p1256_p10 = pnand %p1255_p9, %p1249_p6 }
  0x35   :  { %1259 = shalt.err (!%p1256_p10)
}
  0x36   :  { %67 = dma.hbm_to_vmem [thread:$0]  %s1425_s4, 256, %s62_s14, [#allocation9], %s1290_s26, %s1290_s26, %s1291_s27  }
  0x37   :  { %1280 = dma.done.wait [#allocation3], 32  }
  0x38   :  { %1281 = vsyncadd [#allocation3], 4294967264 }
  0x39   :  { %1282 = dma.done.wait [#allocation6], 160  }
  0x3a   :  { %1283 = vsyncadd [#allocation6], 4294967136 }
  0x3b   :  { %1284 = dma.done.wait [#allocation9], 4864  }
  0x3c   :  { %1285 = vsyncadd [#allocation9], 4294962432  ;;  %v1295_v0 = vmov 0.0   ;;  %vm1296_vm0 = vmmov 0   ;;  %vm101_vm1 = vcmask 64512   ;;  %v95_v1 = vld [vmem:[#allocation7] sm:$0xff] }
  0x3d   :  { %1042 = vmatprep.subr.mxu0 %v1295_v0  ;;  %1044 = vmatprep.mubr.msk.f32.mxu0 %vm1296_vm0, %v1295_v0  ;;  %v94_v2 = vld [vmem:[#allocation5] sm:$0x3]  ;;  %v83_v3 = vld [vmem:[#allocation2] sm:$0x3]  ;;  %vm85_vm2 = vcmask 254976   ;;  %v186_v15 = vld [vmem:[#allocation8 + $0x18] sm:$0xff] }
  0x3e   :  { %1047 = vmatprep.subr.mxu1 %v1295_v0  ;;  %1055 = vmatprep.mubr.msk.f32.mxu1 %vm1296_vm0, %v1295_v0  ;;  %v84_v4 = vmul.f32 %v83_v3, %v83_v3  ;;  %v976_v6 = vld [vmem:[#allocation10] ss:$0 sm:$0xff]  ;;  %v185_v16 = vld [vmem:[#allocation8 + $0x10] sm:$0xff]  ;;  %v191_v17 = vld [vmem:[#allocation8 + $0x38] sm:$0xff]  ;;  %vm192_vm3 = vcmask 261120   ;;  %s1297_s2 = smov [#allocation11]  }
  0x3f   :  { %1043 = vmatpush3.msra.mxu0 %v95_v1  ;;  %v190_v18 = vld [vmem:[#allocation8 + $0x30] sm:$0xff]  ;;  %v184_v19 = vld [vmem:[#allocation8 + $0x8] sm:$0xff]  ;;  %1048 = vmatpush3.msra.mxu1 %v191_v17  ;;  %v183_v21 = vld [vmem:[#allocation8] sm:$0xff]  ;;  %s965_s4 = sshll.u32 %s1297_s2, 4  ;;  %s966_s4 = int_to_ptr.vmem [resolvable:$true] %s965_s4 }
  0x40   :  { %1045 = vmatmul.mubr.msk.f32.vlgmr.msra.gmra.mxu0 %vm101_vm1, %v94_v2  ;;  %1058 = vmatprep.subr.mxu0 %v1295_v0  ;;  %v86_v5 = vsel %vm85_vm2, %v84_v4, 0.0  ;;  %v189_v20 = vld [vmem:[#allocation8 + $0x28] sm:$0xff]  ;;  %v188_v22 = vld [vmem:[#allocation8 + $0x20] sm:$0xff]  ;;  %v353_v32 = vld [vmem:[#allocation8 + $0x58] sm:$0xff]  ;;  %s1260_s17 = scalar_lea.vmem %s966_s4, 32  ;;  %p1265_p12 = scmp.lt.s32.totalorder %s966_s4, %s966_s4 }
  0x41   :  { %1066 = vmatprep.mubr.msk.f32.mxu0 %vm1296_vm0, %v1295_v0  ;;  %87 = vadd.xlane.f32.xlu0 %v86_v5  ;;  %v352_v33 = vld [vmem:[#allocation8 + $0x50] sm:$0xff]  ;;  %v351_v34 = vld [vmem:[#allocation8 + $0x48] sm:$0xff]  ;;  %v350_v35 = vld [vmem:[#allocation8 + $0x40] sm:$0xff]  ;;  %p1261_p11 = scmp.ne.s32.totalorder %s966_s4, %s1260_s17  ;;  %p1266_p13 = scmp.lt.s32.totalorder %s1260_s17, %s1260_s17 }
  0x42   :  { %1059 = vmatpush3.msra.mxu0 %v186_v15  ;;  %1049 = vmatprep.subr.mxu1 %v1295_v0  ;;  %v980_v37 = vld [vmem:[#allocation10 + $0x1] ss:$0 sm:$0xff]  ;;  %v440_v44 = vld [vmem:[#allocation8 + $0x78] sm:$0xff]  ;;  %v439_v45 = vld [vmem:[#allocation8 + $0x70] sm:$0xff] }
  0x43   :  { %1060 = vmatprep.subr.mxu0 %v1295_v0  ;;  %1050 = vmatpush3.msra.mxu1 %v190_v18  ;;  %v438_v46 = vld [vmem:[#allocation8 + $0x68] sm:$0xff]  ;;  %v437_v47 = vld [vmem:[#allocation8 + $0x60] sm:$0xff]  ;;  %v527_v55 = vld [vmem:[#allocation8 + $0x98] sm:$0xff]  ;;  %p1267_p0 = por %p1266_p13, %p1265_p12 }
  0x44   :  { %1061 = vmatpush3.msra.mxu0 %v185_v16  ;;  %1051 = vmatprep.subr.mxu1 %v1295_v0  ;;  %v981_v48 = vld [vmem:[#allocation10 + $0x2] ss:$0 sm:$0xff]  ;;  %v526_v56 = vld [vmem:[#allocation8 + $0x90] sm:$0xff]  ;;  %v525_v57 = vld [vmem:[#allocation8 + $0x88] sm:$0xff] }
  0x45   :  { %1062 = vmatprep.subr.mxu0 %v1295_v0  ;;  %1052 = vmatpush3.msra.mxu1 %v189_v20  ;;  %v524_v58 = vld [vmem:[#allocation8 + $0x80] sm:$0xff]  ;;  %v613_v4 = vld [vmem:[#allocation8 + $0xb0] sm:$0xff]  ;;  %v612_v5 = vld [vmem:[#allocation8 + $0xa8] sm:$0xff]  ;;  %p1268_p1 = pnand %p1267_p0, %p1261_p11 }
  0x46   :  { %1063 = vmatpush3.msra.mxu0 %v184_v19  ;;  %1053 = vmatprep.subr.mxu1 %v1295_v0  ;;  %v983_v59 = vld [vmem:[#allocation10 + $0x3] ss:$0 sm:$0xff]  ;;  %v700_v15 = vld [vmem:[#allocation8 + $0xd0] sm:$0xff]  ;;  %v699_v16 = vld [vmem:[#allocation8 + $0xc8] sm:$0xff] }
  0x47   :  { %1064 = vmatprep.subr.mxu0 %v1295_v0  ;;  %1054 = vmatpush3.msra.mxu1 %v188_v22  ;;  %v698_v17 = vld [vmem:[#allocation8 + $0xc0] sm:$0xff] }
  0x48   :  { %1065 = vmatpush3.msra.mxu0 %v183_v21  ;;  %1069 = vmatprep.subr.mxu1 %v1295_v0  ;;  %v987_v18 = vld [vmem:[#allocation10 + $0x5] ss:$0 sm:$0xff] }
  0x49   :  { %1080 = vmatprep.subr.mxu0 %v1295_v0 }
  0xca   :  { %v88_v12 = vpop.xlane.xlu0 %87 }
  0xcb   :  { %v90_v13 = vmul.f32 0.03125, %v88_v12 }
  0xcd   :  { %v91_v14 = vadd.f32 1e-08, %v90_v13 }
  0xcf   :  { %1156 = vrsqrt.f32 %v91_v14  ;;  %v701_v14 = vld [vmem:[#allocation8 + $0xd8] sm:$0xff] }
  0xdc   :  { %v1157_v23 = vpop.eup %1156 }
  0xdd   :  { %v93_v24 = vmul.f32 %v1157_v23, %v83_v3  ;;  %v614_v3 = vld [vmem:[#allocation8 + $0xb8] sm:$0xff] }
  0xdf   :  { %1067 = vmatmul.mubr.msk.f32.vlgmr.msra.gmra.mxu0 %vm192_vm3, %v93_v24 }
  0xe0   :  { %1088 = vmatprep.mubr.msk.f32.mxu0 %vm1296_vm0, %v1295_v0  ;;  %1081 = vmatpush3.msra.mxu0 %v440_v44 }
  0xe1   :  { %1082 = vmatprep.subr.mxu0 %v1295_v0 }
  0xe2   :  { %1083 = vmatpush3.msra.mxu0 %v439_v45 }
  0xe3   :  { %1084 = vmatprep.subr.mxu0 %v1295_v0 }
  0xe4   :  { %1085 = vmatpush3.msra.mxu0 %v438_v46 }
  0xe5   :  { %1086 = vmatprep.subr.mxu0 %v1295_v0 }
  0xe6   :  { %1087 = vmatpush3.msra.mxu0 %v437_v47  ;;  %v993_v47 = vld [vmem:[#allocation10 + $0x8] ss:$0 sm:$0xff] }
  0xe7   :  { %1102 = vmatprep.subr.mxu0 %v1295_v0 }
 0x100   :  { %v171_v7 = vpop.f32.mrf.mxu0 }
 0x101   :  { %v172_v8 = vadd.f32 %v976_v6, %v171_v7  ;;  %v611_v6 = vld [vmem:[#allocation8 + $0xa0] sm:$0xff] }
 0x102   :  { %v1046_v9 = vpop.f32.mrf.mxu0  ;;  %v985_v7 = vld [vmem:[#allocation10 + $0x4] ss:$0 sm:$0xff] }
 0x103   :  { %v175_v10 = vmul.f32 %v172_v8, %v172_v8 }
 0x105   :  { %v176_v11 = vsel %vm85_vm2, %v175_v10, 0.0 }
 0x106   :  { %177 = vadd.xlane.f32.xlu0 %v176_v11 }
 0x18f   :  { %v178_v25 = vpop.xlane.xlu0 %177 }
 0x190   :  { %v179_v26 = vmul.f32 0.03125, %v178_v25  ;;  %v788_v25 = vld [vmem:[#allocation8 + $0xf8] sm:$0xff] }
 0x192   :  { %v180_v27 = vadd.f32 1e-08, %v179_v26  ;;  %v787_v26 = vld [vmem:[#allocation8 + $0xf0] sm:$0xff] }
 0x194   :  { %1158 = vrsqrt.f32 %v180_v27  ;;  %v786_v27 = vld [vmem:[#allocation8 + $0xe8] sm:$0xff] }
 0x19f   :  { %v335_v30 = vpop.f32.mrf.mxu0 }
 0x1a1   :  { %v1159_v28 = vpop.eup %1158  ;;  %v1068_v31 = vpop.f32.mrf.mxu0 }
 0x1a2   :  { %v182_v29 = vmul.f32 %v1159_v28, %v172_v8  ;;  %v785_v28 = vld [vmem:[#allocation8 + $0xe0] sm:$0xff] }
 0x1a4   :  { %1056 = vmatmul.mubr.msk.f32.vlgmr.msra.gmra.mxu1 %vm192_vm3, %v182_v29  ;;  %v989_v29 = vld [vmem:[#allocation10 + $0x6] ss:$0 sm:$0xff] }
 0x1a5   :  { %1077 = vmatprep.mubr.msk.f32.mxu1 %vm1296_vm0, %v1295_v0  ;;  %1070 = vmatpush3.msra.mxu1 %v353_v32 }
 0x1a6   :  { %1071 = vmatprep.subr.mxu1 %v1295_v0 }
 0x1a7   :  { %1072 = vmatpush3.msra.mxu1 %v352_v33 }
 0x1a8   :  { %1073 = vmatprep.subr.mxu1 %v1295_v0 }
 0x1a9   :  { %1074 = vmatpush3.msra.mxu1 %v351_v34 }
 0x1aa   :  { %1075 = vmatprep.subr.mxu1 %v1295_v0 }
 0x1ab   :  { %1076 = vmatpush3.msra.mxu1 %v350_v35 }
 0x1ac   :  { %1091 = vmatprep.subr.mxu1 %v1295_v0 }
 0x264   :  { %v262_v36 = vpop.f32.mrf.mxu1 }
 0x265   :  { %v336_v38 = vadd.f32 %v335_v30, %v262_v36  ;;  %v875_v36 = vld [vmem:[#allocation8 + $0x118] sm:$0xff] }
 0x266   :  { %v1057_v39 = vpop.f32.mrf.mxu1 }
 0x267   :  { %v344_v40 = vadd.f32 %v980_v37, %v336_v38  ;;  %v874_v37 = vld [vmem:[#allocation8 + $0x110] sm:$0xff]  ;;  %v873_v38 = vld [vmem:[#allocation8 + $0x108] sm:$0xff]  ;;  %v872_v39 = vld [vmem:[#allocation8 + $0x100] sm:$0xff] }
 0x269   :  { %vm345_vm4 = vcmp.ge.f32.partialorder %v344_v40, 0.0  ;;  %v346_v41 = vmul.f32 0.2, %v344_v40 }
 0x26b   :  { %v347_v42 = vsel %vm345_vm4, %v344_v40, %v346_v41  ;;  %v991_v40 = vld [vmem:[#allocation10 + $0x7] ss:$0 sm:$0xff] }
 0x26c   :  { %v348_v43 = vmul.f32 1.4142135, %v347_v42 }
 0x26e   :  { %1078 = vmatmul.mubr.msk.f32.vlgmr.msra.gmra.mxu1 %vm192_vm3, %v348_v43 }
 0x26f   :  { %1099 = vmatprep.mubr.msk.f32.mxu1 %vm1296_vm0, %v1295_v0  ;;  %1092 = vmatpush3.msra.mxu1 %v527_v55 }
 0x270   :  { %1093 = vmatprep.subr.mxu1 %v1295_v0 }
 0x271   :  { %1094 = vmatpush3.msra.mxu1 %v526_v56 }
 0x272   :  { %1095 = vmatprep.subr.mxu1 %v1295_v0 }
 0x273   :  { %1096 = vmatpush3.msra.mxu1 %v525_v57 }
 0x274   :  { %1097 = vmatprep.subr.mxu1 %v1295_v0 }
 0x275   :  { %1098 = vmatpush3.msra.mxu1 %v524_v58 }
 0x276   :  { %1113 = vmatprep.subr.mxu1 %v1295_v0 }
 0x32e   :  { %v428_v49 = vpop.f32.mrf.mxu1 }
 0x32f   :  { %v429_v50 = vadd.f32 %v981_v48, %v428_v49 }
 0x330   :  { %v1079_v51 = vpop.f32.mrf.mxu1 }
 0x331   :  { %vm432_vm5 = vcmp.ge.f32.partialorder %v429_v50, 0.0  ;;  %v433_v52 = vmul.f32 0.2, %v429_v50 }
 0x333   :  { %v434_v53 = vsel %vm432_vm5, %v429_v50, %v433_v52 }
 0x334   :  { %v435_v54 = vmul.f32 1.4142135, %v434_v53 }
 0x336   :  { %1089 = vmatmul.mubr.msk.f32.vlgmr.msra.gmra.mxu0 %vm192_vm3, %v435_v54 }
 0x337   :  { %1110 = vmatprep.mubr.msk.f32.mxu0 %vm1296_vm0, %v1295_v0  ;;  %1103 = vmatpush3.msra.mxu0 %v614_v3 }
 0x338   :  { %1104 = vmatprep.subr.mxu0 %v1295_v0 }
 0x339   :  { %1105 = vmatpush3.msra.mxu0 %v613_v4 }
 0x33a   :  { %1106 = vmatprep.subr.mxu0 %v1295_v0 }
 0x33b   :  { %1107 = vmatpush3.msra.mxu0 %v612_v5 }
 0x33c   :  { %1108 = vmatprep.subr.mxu0 %v1295_v0 }
 0x33d   :  { %1109 = vmatpush3.msra.mxu0 %v611_v6 }
 0x33e   :  { %1124 = vmatprep.subr.mxu0 %v1295_v0 }
 0x3f6   :  { %v515_v60 = vpop.f32.mrf.mxu0 }
 0x3f7   :  { %v516_v61 = vadd.f32 %v983_v59, %v515_v60 }
 0x3f8   :  { %v1090_v62 = vpop.f32.mrf.mxu0 }
 0x3f9   :  { %vm519_vm6 = vcmp.ge.f32.partialorder %v516_v61, 0.0  ;;  %v520_v63 = vmul.f32 0.2, %v516_v61 }
 0x3fb   :  { %v521_v1 = vsel %vm519_vm6, %v516_v61, %v520_v63 }
 0x3fc   :  { %v522_v2 = vmul.f32 1.4142135, %v521_v1 }
 0x3fe   :  { %1100 = vmatmul.mubr.msk.f32.vlgmr.msra.gmra.mxu1 %vm192_vm3, %v522_v2 }
 0x3ff   :  { %1121 = vmatprep.mubr.msk.f32.mxu1 %vm1296_vm0, %v1295_v0  ;;  %1114 = vmatpush3.msra.mxu1 %v701_v14 }
 0x400   :  { %1115 = vmatprep.subr.mxu1 %v1295_v0 }
 0x401   :  { %1116 = vmatpush3.msra.mxu1 %v700_v15 }
 0x402   :  { %1117 = vmatprep.subr.mxu1 %v1295_v0 }
 0x403   :  { %1118 = vmatpush3.msra.mxu1 %v699_v16 }
 0x404   :  { %1119 = vmatprep.subr.mxu1 %v1295_v0 }
 0x405   :  { %1120 = vmatpush3.msra.mxu1 %v698_v17 }
 0x406   :  { %1135 = vmatprep.subr.mxu1 %v1295_v0 }
 0x4be   :  { %v602_v8 = vpop.f32.mrf.mxu1 }
 0x4bf   :  { %v603_v9 = vadd.f32 %v985_v7, %v602_v8 }
 0x4c0   :  { %v1101_v10 = vpop.f32.mrf.mxu1 }
 0x4c1   :  { %vm606_vm7 = vcmp.ge.f32.partialorder %v603_v9, 0.0  ;;  %v607_v11 = vmul.f32 0.2, %v603_v9 }
 0x4c3   :  { %v608_v12 = vsel %vm606_vm7, %v603_v9, %v607_v11 }
 0x4c4   :  { %v609_v13 = vmul.f32 1.4142135, %v608_v12 }
 0x4c6   :  { %1111 = vmatmul.mubr.msk.f32.vlgmr.msra.gmra.mxu0 %vm192_vm3, %v609_v13 }
 0x4c7   :  { %1132 = vmatprep.mubr.msk.f32.mxu0 %vm1296_vm0, %v1295_v0  ;;  %1125 = vmatpush3.msra.mxu0 %v788_v25 }
 0x4c8   :  { %1126 = vmatprep.subr.mxu0 %v1295_v0 }
 0x4c9   :  { %1127 = vmatpush3.msra.mxu0 %v787_v26 }
 0x4ca   :  { %1128 = vmatprep.subr.mxu0 %v1295_v0 }
 0x4cb   :  { %1129 = vmatpush3.msra.mxu0 %v786_v27 }
 0x4cc   :  { %1130 = vmatprep.subr.mxu0 %v1295_v0 }
 0x4cd   :  { %1131 = vmatpush3.msra.mxu0 %v785_v28 }
 0x586   :  { %v689_v19 = vpop.f32.mrf.mxu0 }
 0x587   :  { %v690_v20 = vadd.f32 %v987_v18, %v689_v19 }
 0x588   :  { %v1112_v21 = vpop.f32.mrf.mxu0 }
 0x589   :  { %vm693_vm8 = vcmp.ge.f32.partialorder %v690_v20, 0.0  ;;  %v694_v22 = vmul.f32 0.2, %v690_v20 }
 0x58b   :  { %v695_v23 = vsel %vm693_vm8, %v690_v20, %v694_v22 }
 0x58c   :  { %v696_v24 = vmul.f32 1.4142135, %v695_v23 }
 0x58e   :  { %1122 = vmatmul.mubr.msk.f32.vlgmr.msra.gmra.mxu1 %vm192_vm3, %v696_v24 }
 0x58f   :  { %1143 = vmatprep.mubr.msk.f32.mxu1 %vm1296_vm0, %v1295_v0  ;;  %1136 = vmatpush3.msra.mxu1 %v875_v36 }
 0x590   :  { %1137 = vmatprep.subr.mxu1 %v1295_v0 }
 0x591   :  { %1138 = vmatpush3.msra.mxu1 %v874_v37 }
 0x592   :  { %1139 = vmatprep.subr.mxu1 %v1295_v0 }
 0x593   :  { %1140 = vmatpush3.msra.mxu1 %v873_v38 }
 0x594   :  { %1141 = vmatprep.subr.mxu1 %v1295_v0 }
 0x595   :  { %1142 = vmatpush3.msra.mxu1 %v872_v39 }
 0x64e   :  { %v776_v30 = vpop.f32.mrf.mxu1 }
 0x64f   :  { %v777_v31 = vadd.f32 %v989_v29, %v776_v30 }
 0x650   :  { %v1123_v32 = vpop.f32.mrf.mxu1 }
 0x651   :  { %vm780_vm9 = vcmp.ge.f32.partialorder %v777_v31, 0.0  ;;  %v781_v33 = vmul.f32 0.2, %v777_v31 }
 0x653   :  { %v782_v34 = vsel %vm780_vm9, %v777_v31, %v781_v33 }
 0x654   :  { %v783_v35 = vmul.f32 1.4142135, %v782_v34 }
 0x656   :  { %1133 = vmatmul.mubr.msk.f32.vlgmr.msra.gmra.mxu0 %vm192_vm3, %v783_v35 }
 0x716   :  { %v863_v41 = vpop.f32.mrf.mxu0 }
 0x717   :  { %v864_v42 = vadd.f32 %v991_v40, %v863_v41 }
 0x718   :  { %v1134_v43 = vpop.f32.mrf.mxu0 }
 0x719   :  { %vm867_vm10 = vcmp.ge.f32.partialorder %v864_v42, 0.0  ;;  %v868_v44 = vmul.f32 0.2, %v864_v42 }
 0x71b   :  { %v869_v45 = vsel %vm867_vm10, %v864_v42, %v868_v44 }
 0x71c   :  { %v870_v46 = vmul.f32 1.4142135, %v869_v45 }
 0x71e   :  { %1144 = vmatmul.mubr.msk.f32.vlgmr.msra.gmra.mxu1 %vm192_vm3, %v870_v46 }
 0x7de   :  { %v950_v48 = vpop.f32.mrf.mxu1 }
 0x7df   :  { %v951_v49 = vadd.f32 %v993_v47, %v950_v48 }
 0x7e0   :  { %v1145_v50 = vpop.f32.mrf.mxu1 }
 0x7e1   :  { %vm954_vm11 = vcmp.ge.f32.partialorder %v951_v49, 0.0  ;;  %v955_v51 = vmul.f32 0.2, %v951_v49 }
 0x7e3   :  { %v956_v0 = vsel %vm954_vm11, %v951_v49, %v955_v51 }
 0x7e4   :  { %v957_v52 = vmul.f32 1.4142135, %v956_v0 }
 0x7e6   :  { %958 = vst.msk [vmem:[#allocation11] sm:$0x3] %vm85_vm2, %v957_v52 }
 0x7e7   :  { %1271 = shalt.err (!%p1268_p1)
}
 0x7e8   :  { %968 = dma.vmem_to_hbm [thread:$0]  %s966_s4, 32, %s1426_s5, [#allocation4]  }
 0x7e9   :  { %1286 = dma.done.wait [#allocation4], 32  }
 0x7ea   :  { %1287 = vsyncadd [#allocation4], 4294967264 }
 0x7eb   :  { %972 = vsyncpa [#allocation3], 1 }
 0x7ec   :  { %973 = vsyncpa [#allocation6], 1 }
 0x7ed   :  { %974 = vsyncpa [#allocation9], 1 }
 0x7ee   :  { %975 = vsyncpa [#allocation4], 1 }

</bundles_post_ra>
